<compile_context>
chip_gen: v7x
topology: tpu7x:2x2x1
jax: 0.10.0
libtpu: 0.0.40
codegen_flags: <defaults>
</compile_context>

<pallas_src>
import jax
import jax.numpy as jnp
from jax.experimental import pallas as pl
from jax.experimental.pallas import tpu as pltpu


_MAX_TILE_N = 8192   # rows per grid step; ~16 MiB of double-buffered VMEM


def _round_up(n, m):
    return ((n + m - 1) // m) * m


def _pick_tile(n):
    """Rows per grid step: multiple of 8, >=2 grid steps when n > 8, capped."""
    if n <= 8:
        return n  # single block whose dims equal the full array dims
    half = _round_up(pl.cdiv(n, 2), 8)   # aim for >= 2 parallel steps (megacore)
    return max(8, min(_MAX_TILE_N, half))


def _linear_vpu_kernel(x_ref, w_ref, b_ref, o_ref):
    # x_ref: (TILE_N, 3) VMEM block of the native (N, 3) input
    # w_ref: (1, 3) SMEM    b_ref: (1, 1) SMEM   (4 scalars total)
    # o_ref: (TILE_N, 1) VMEM block of the (N, 1) output
    w0 = w_ref[0, 0]
    w1 = w_ref[0, 1]
    w2 = w_ref[0, 2]
    b = b_ref[0, 0]
    x = x_ref[...].astype(jnp.float32)                            # (TILE_N, 3)
    # Pure-VPU affine map; scalar * vreg broadcasts, f32 accumulation.
    y = x[:, 0:1] * w0 + x[:, 1:2] * w1 + x[:, 2:3] * w2 + b      # (TILE_N, 1)
    o_ref[...] = y.astype(o_ref.dtype)


def poly_model_forward(x, weight, bias):
    """Pallas implementation of poly_model.forward (nn.Linear(3, 1))."""
    n, in_features = x.shape
    assert in_features == 3
    out_features = weight.shape[0]
    assert out_features == 1

    tile_n = _pick_tile(n)
    grid = (pl.cdiv(n, tile_n),)

    # Parameters as SMEM scalars (no VMEM tiles, no per-step DMAs).
    w_smem = weight.astype(jnp.float32)                # (1, 3)
    b_smem = bias.reshape(1, 1).astype(jnp.float32)    # (1, 1)

    return pl.pallas_call(
        _linear_vpu_kernel,
        out_shape=jax.ShapeDtypeStruct((n, out_features), x.dtype),
        grid=grid,
        in_specs=[
            pl.BlockSpec((tile_n, 3), lambda i: (i, 0)),
            pl.BlockSpec(memory_space=pltpu.MemorySpace.SMEM),
            pl.BlockSpec(memory_space=pltpu.MemorySpace.SMEM),
        ],
        out_specs=pl.BlockSpec((tile_n, 1), lambda i: (i, 0)),
        compiler_params=pltpu.CompilerParams(
            dimension_semantics=("parallel",),
            vmem_limit_bytes=32 * 1024 * 1024,
        ),
    )(x, w_smem, b_smem)


if __name__ == "__main__":
    key = jax.random.PRNGKey(0)
    k_x, k_w, k_b = jax.random.split(key, 3)

    in_features, out_features = 3, 1
    bound = 1.0 / jnp.sqrt(in_features)
    weight = jax.random.uniform(
        k_w, (out_features, in_features), minval=-bound, maxval=bound,
        dtype=jnp.float32)
    bias = jax.random.uniform(
        k_b, (out_features,), minval=-bound, maxval=bound, dtype=jnp.float32)

    # Primary tiny-batch case (matches the module's typical use).
    batch = 8
    x = jax.random.normal(k_x, (batch, in_features), dtype=jnp.float32)
    out = poly_model_forward(x, weight, bias)
    jax.block_until_ready(out)
    ref = x @ weight.T + bias
    assert out.shape == (batch, out_features)
    assert jnp.allclose(out, ref, atol=1e-5, rtol=1e-5)

    # Secondary case: 2-step grid with a partial last block (no padding ops).
    batch2 = 300
    x2 = jax.random.normal(jax.random.PRNGKey(1), (batch2, in_features),
                           dtype=jnp.float32)
    out2 = poly_model_forward(x2, weight, bias)
    jax.block_until_ready(out2)
    ref2 = x2 @ weight.T + bias
    assert out2.shape == (batch2, out_features)
    assert jnp.allclose(out2, ref2, atol=1e-5, rtol=1e-5)

    print("KERNEL_OK")
</pallas_src>

<mosaic_0001>
module attributes {stable_mosaic.version = 11 : i64} {
  func.func @_linear_vpu_kernel(%arg0: i32, %arg1: memref<8x3xf32, #tpu.memory_space<vmem>>, %arg2: memref<1x3xf32, #tpu.memory_space<smem>>, %arg3: memref<1x1xf32, #tpu.memory_space<smem>>, %arg4: memref<8x1xf32, #tpu.memory_space<vmem>>) attributes {dimension_semantics = [#tpu.dimension_semantics<parallel>], iteration_bounds = array<i64: 1>, scalar_prefetch = 0 : i64, scratch_operands = 0 : i64, tpu.core_type = #tpu.core_type<tc>, window_params = [{transform_indices = @transform_0, window_bounds = array<i64: 8, 3>}, {transform_indices = @transform_1, window_bounds = array<i64: 1, 3>}, {transform_indices = @transform_2, window_bounds = array<i64: 1, 1>}, {transform_indices = @transform_3, window_bounds = array<i64: 8, 1>}]} {
    %c0 = arith.constant 0 : index
    %c0_0 = arith.constant 0 : index
    %0 = memref.load %arg2[%c0, %c0_0] : memref<1x3xf32, #tpu.memory_space<smem>>
    %c0_1 = arith.constant 0 : index
    %c1 = arith.constant 1 : index
    %1 = memref.load %arg2[%c0_1, %c1] : memref<1x3xf32, #tpu.memory_space<smem>>
    %c0_2 = arith.constant 0 : index
    %c2 = arith.constant 2 : index
    %2 = memref.load %arg2[%c0_2, %c2] : memref<1x3xf32, #tpu.memory_space<smem>>
    %c0_3 = arith.constant 0 : index
    %c0_4 = arith.constant 0 : index
    %3 = memref.load %arg3[%c0_3, %c0_4] : memref<1x1xf32, #tpu.memory_space<smem>>
    %c0_5 = arith.constant 0 : index
    %c0_6 = arith.constant 0 : index
    %4 = vector.load %arg1[%c0_5, %c0_6] : memref<8x3xf32, #tpu.memory_space<vmem>>, vector<8x3xf32>
    %5 = vector.extract_strided_slice %4 {offsets = [0, 0], sizes = [8, 1], strides = [1, 1]} : vector<8x3xf32> to vector<8x1xf32>
    %6 = vector.broadcast %0 : f32 to vector<8x1xf32>
    %7 = arith.mulf %5, %6 : vector<8x1xf32>
    %8 = vector.extract_strided_slice %4 {offsets = [0, 1], sizes = [8, 1], strides = [1, 1]} : vector<8x3xf32> to vector<8x1xf32>
    %9 = vector.broadcast %1 : f32 to vector<8x1xf32>
    %10 = arith.mulf %8, %9 : vector<8x1xf32>
    %11 = arith.addf %7, %10 : vector<8x1xf32>
    %12 = vector.extract_strided_slice %4 {offsets = [0, 2], sizes = [8, 1], strides = [1, 1]} : vector<8x3xf32> to vector<8x1xf32>
    %13 = vector.broadcast %2 : f32 to vector<8x1xf32>
    %14 = arith.mulf %12, %13 : vector<8x1xf32>
    %15 = arith.addf %11, %14 : vector<8x1xf32>
    %16 = vector.broadcast %3 : f32 to vector<8x1xf32>
    %17 = arith.addf %15, %16 : vector<8x1xf32>
    %c0_7 = arith.constant 0 : index
    %c0_8 = arith.constant 0 : index
    %18 = vector.load %arg4[%c0_7, %c0_8] : memref<8x1xf32, #tpu.memory_space<vmem>>, vector<8x1xf32>
    tpu.vector_store %arg4[%c0_7, %c0_8], %17 {strides = array<i32>} : memref<8x1xf32, #tpu.memory_space<vmem>>, vector<8x1xf32>,
    return
  }
  func.func @transform_0(%arg0: i32) -> (i32, i32) {
    %c0_i32 = arith.constant 0 : i32
    %c0_i32_0 = arith.constant 0 : i32
    return %arg0, %c0_i32 : i32, i32
  }
  func.func @transform_1(%arg0: i32) -> (i32, i32) {
    %c0_i32 = arith.constant 0 : i32
    %c0_i32_0 = arith.constant 0 : i32
    %c0_i32_1 = arith.constant 0 : i32
    return %c0_i32, %c0_i32_0 : i32, i32
  }
  func.func @transform_2(%arg0: i32) -> (i32, i32) {
    %c0_i32 = arith.constant 0 : i32
    %c0_i32_0 = arith.constant 0 : i32
    %c0_i32_1 = arith.constant 0 : i32
    return %c0_i32, %c0_i32_0 : i32, i32
  }
  func.func @transform_3(%arg0: i32) -> (i32, i32) {
    %c0_i32 = arith.constant 0 : i32
    %c0_i32_0 = arith.constant 0 : i32
    return %arg0, %c0_i32 : i32, i32
  }
}

</mosaic_0001>

<bundles_post_ra>
// kernel: tpu_custom_call.1
= control target key start
LH: loop header
LB: loop body
LE: loop exit
PB: predicated region body
PF: predicated region fallthrough
CT: control target
= control target key end

     0   :  { %9 = vsyncpa [#allocation4], 0  ;;  %s112_s0 = inlined_call_operand.vmem [shape: f32[8,3], index: 0, kind: input, shape index: {}]   ;;  %s113_s1 = inlined_call_operand.vmem [shape: f32[1,3], index: 1, kind: input, shape index: {}]   ;;  %s114_s2 = inlined_call_operand.<no memory space> [shape: f32[1,1], index: 2, kind: input, shape index: {}]   ;;  %s115_s3 = inlined_call_operand.vmem [shape: f32[8,1], index: 3, kind: output, shape index: {}]  }
   0x1   :  { %s18_s14 = sshll.u32 %s113_s1, 4  ;;  %s19_s14 = int_to_ptr.vmem [resolvable:$true] %s18_s14 }
   0x2   :  { %s63_s15 = scalar_lea.vmem %s19_s14, 16  ;;  %p68_p1 = scmp.lt.s32.totalorder %s19_s14, %s19_s14 }
   0x3   :  { %p64_p0 = scmp.ne.s32.totalorder %s19_s14, %s63_s15  ;;  %p69_p2 = scmp.lt.s32.totalorder %s63_s15, %s63_s15 }
   0x5   :  { %p70_p3 = por %p69_p2, %p68_p1 }
   0x7   :  { %p71_p4 = pnand %p70_p3, %p64_p0 }
   0x9   :  { %74 = shalt.err (!%p71_p4)
}
   0xa   :  { %s77_s16 = smov [#allocation3]  }
   0xb   :  { %21 = dma.vmem_to_smem %s19_s14, 16, %s77_s16, [#allocation4]  }
   0xc   :  { %75 = dma.done.wait [#allocation4], 16  }
   0xd   :  { %76 = vsyncadd [#allocation4], 4294967280 }
   0xe   :  { %27 = sfence }
   0xf   :  { %s58_s17 = sld [smem:[#allocation3 + $0x1]]  ;;  %s59_s18 = sld [smem:[#allocation3 + $0x2]]  ;;  %v32_v0 = vld [vmem:[%s112_s0] sm:$0xff]  ;;  %v49_v9 = vstv %s114_s2  ;;  %vm51_vm0 = vcmask 7168  }
  0x10   :  { %s78_s1 = smov 127   ;;  %s79_s21 = smov 126  }
  0x11   :  { %s28_s22 = sld [smem:[#allocation3]] }
  0x15   :  { %v35_v1 = vstv %s58_s17  ;;  %v42_v3 = vstv %s59_s18 }
  0x16   :  { %v36_v2 = vmul.f32 %v35_v1, %v32_v0  ;;  %v43_v4 = vmul.f32 %v42_v3, %v32_v0 }
  0x17   :  { %v33_v5 = vstv %s28_s22 }
  0x18   :  { %38 = vrot.lane.b32.xlu0 %v36_v2, %s78_s1  ;;  %v34_v6 = vmul.f32 %v33_v5, %v32_v0 }
  0x1c   :  { %45 = vrot.lane.b32.xlu0 %v43_v4, %s79_s21 }
  0x8a   :  { %v39_v7 = vpop.permute.xlu0 %38 }
  0x8b   :  { %v41_v8 = vadd.f32 %v39_v7, %v34_v6 }
  0x8e   :  { %v46_v10 = vpop.permute.xlu0 %45 }
  0x8f   :  { %v48_v11 = vadd.f32 %v46_v10, %v41_v8 }
  0x91   :  { %v50_v12 = vadd.f32 %v49_v9, %v48_v11 }
  0x93   :  { %52 = vst.msk [vmem:[%s115_s3] sm:$0xff] %vm51_vm0, %v50_v12 }
  0x94   :  { %57 = vsyncpa [#allocation4], 1 }

</bundles_post_ra>
